<compile_context>
chip_gen: v7x
topology: tpu7x:2x2x1
jax: 0.10.0
libtpu: 0.0.40
codegen_flags: <defaults>
</compile_context>

<pallas_src>
import functools
import math

import jax
import jax.numpy as jnp
import numpy as np
from jax.experimental import pallas as pl
from jax.experimental.pallas import tpu as pltpu


# ----------------------------------------------------------------------------
# tiling helpers
# ----------------------------------------------------------------------------
def _round_up(x, m):
    return ((x + m - 1) // m) * m


def _pick_tile(n_rows, per_row_bytes, *, vmem_budget=8 * 1024 * 1024, cap=512):
    """Pick a row-tile that fits the VMEM stream budget, multiple of 8."""
    t = vmem_budget // max(per_row_bytes, 1)
    t = max(8, min(cap, (t // 8) * 8))
    t = min(t, _round_up(n_rows, 8))
    # Keep >= 2 grid steps when possible so a parallel grid axis can be split
    # across v7x's two TensorCores (no effect on v5e/v6e).
    if _round_up(n_rows, t) // t < 2 and n_rows > 8:
        t = max(8, _round_up((n_rows + 1) // 2, 8))
    n_pad = _round_up(n_rows, t)
    return t, n_pad


# ----------------------------------------------------------------------------
# Kernel 1: plain linear projection  y = x @ W.T   (nn.Linear, bias=False)
#           (weight is passed pre-transposed: wt = W.T, shape (Din, Dout))
# ----------------------------------------------------------------------------
def linear_kernel(x_ref, wt_ref, o_ref):
    y = jnp.dot(x_ref[...].astype(jnp.float32), wt_ref[...],
                preferred_element_type=jnp.float32)
    o_ref[...] = y.astype(o_ref.dtype)


def linear(x, w):
    N, Din = x.shape
    Dout = w.shape[0]
    wt = w.T  # transpose once on the host side; no per-step in-kernel transpose

    per_row = 4 * (2 * (Din + Dout) + Dout)
    tile_n, n_pad = _pick_tile(N, per_row)
    xp = jnp.pad(x, ((0, n_pad - N), (0, 0))) if n_pad != N else x

    out = pl.pallas_call(
        linear_kernel,
        out_shape=jax.ShapeDtypeStruct((n_pad, Dout), jnp.float32),
        grid=(n_pad // tile_n,),
        in_specs=[
            pl.BlockSpec((tile_n, Din), lambda i: (i, 0)),
            pl.BlockSpec((Din, Dout), lambda i: (0, 0)),
        ],
        out_specs=pl.BlockSpec((tile_n, Dout), lambda i: (i, 0)),
        compiler_params=pltpu.CompilerParams(
            dimension_semantics=("parallel",),
            vmem_limit_bytes=32 * 1024 * 1024),
    )(xp, wt)
    return out[:N]


# ----------------------------------------------------------------------------
# Kernel 2: fused dst projection + time-aware attention reduce + update + ELU
#
#   dst_h  = orig @ W_h.T                                     (TN, D)
#   te_q   = cos(time * freq_q + phase_q)                     (TN, L, D)
#   e      = sum((te_q + nbr_h) * dst_h[:,None,:], -1)/sqrt(D)
#   alpha  = softmax(e, axis=1)
#   te_k   = te_q (shared params)  or  cos(time*freq_k+phase_k)
#   h_long = sum(alpha[:,:,None] * (nbr_h + te_k), axis=1)    (TN, D)
#   out    = elu([h_long, orig] @ W_update.T)                 (TN, D)
#
# inputs: nbr_h (TN,L,D), time (TN,L), orig (TN,D),
#         te_params (4,D) = [freq_q; phase_q; freq_k; phase_k],
#         w_all (3D,D)    = [W_h.T ; W_update.T]
# ----------------------------------------------------------------------------
def attn_reduce_update_kernel(nbr_ref, time_ref, orig_ref, p_ref, w_ref, out_ref,
                              *, share_te):
    nbr = nbr_ref[...].astype(jnp.float32)        # (TN, L, D)
    t = time_ref[...].astype(jnp.float32)         # (TN, L)
    orig = orig_ref[...].astype(jnp.float32)      # (TN, D)
    D = orig.shape[-1]

    w_h = w_ref[0:D, :]                            # (D, D)   = W_h.T
    w_upd = w_ref[D:, :]                           # (2D, D)  = W_update.T

    # dst-side projection fused here (orig is already streamed in).
    dst_h = jnp.dot(orig, w_h, preferred_element_type=jnp.float32)   # (TN, D)

    pp = p_ref[...]                                # (4, D)
    freq_q = pp[0:1].reshape(1, 1, D)
    phase_q = pp[1:2].reshape(1, 1, D)

    t3 = t[:, :, None]                             # (TN, L, 1)
    te_q = jnp.cos(t3 * freq_q + phase_q)          # (TN, L, D)

    inv_sqrt_d = jnp.float32(1.0 / math.sqrt(D))
    e = jnp.sum((te_q + nbr) * dst_h[:, None, :], axis=2) * inv_sqrt_d  # (TN, L)

    # softmax over the neighbor axis (dim=1); atten_drop is eval-mode identity
    e_max = jnp.max(e, axis=1, keepdims=True)
    p = jnp.exp(e - e_max)
    alpha = p * pl.reciprocal(jnp.sum(p, axis=1, keepdims=True), approx=True)

    if share_te:
        te_k = te_q                                # q/k TimeEncode params identical
    else:
        freq_k = pp[2:3].reshape(1, 1, D)
        phase_k = pp[3:4].reshape(1, 1, D)
        te_k = jnp.cos(t3 * freq_k + phase_k)

    h_long = jnp.sum(alpha[:, :, None] * (nbr + te_k), axis=1)     # (TN, D)

    # single fused update matmul: [h_long, orig] @ W_update.T
    h_cat = jnp.concatenate([h_long, orig], axis=-1)               # (TN, 2D)
    y = jnp.dot(h_cat, w_upd, preferred_element_type=jnp.float32)  # (TN, D)
    out_ref[...] = jnp.where(y > 0, y, jnp.expm1(y)).astype(out_ref.dtype)  # ELU


def attn_reduce_update(nbr_h, time, orig, te_params, w_all, *, share_te=True):
    N, L, D = nbr_h.shape

    # bytes per row: double-buffered streams + in-kernel f32 (L,D) temporaries
    per_row = 4 * (2 * (L * D + L + 2 * D) + 4 * L * D)
    tile_n, n_pad = _pick_tile(N, per_row)

    pad = n_pad - N
    if pad:
        nbr_h = jnp.pad(nbr_h, ((0, pad), (0, 0), (0, 0)))
        time = jnp.pad(time, ((0, pad), (0, 0)))
        orig = jnp.pad(orig, ((0, pad), (0, 0)))

    kernel = functools.partial(attn_reduce_update_kernel, share_te=share_te)
    out = pl.pallas_call(
        kernel,
        out_shape=jax.ShapeDtypeStruct((n_pad, D), jnp.float32),
        grid=(n_pad // tile_n,),
        in_specs=[
            pl.BlockSpec((tile_n, L, D), lambda i: (i, 0, 0)),  # nbr_h mailbox
            pl.BlockSpec((tile_n, L), lambda i: (i, 0)),        # time mailbox
            pl.BlockSpec((tile_n, D), lambda i: (i, 0)),        # original features
            pl.BlockSpec((4, D), lambda i: (0, 0)),             # TimeEncode params
            pl.BlockSpec((3 * D, D), lambda i: (0, 0)),         # [W_h.T ; W_update.T]
        ],
        out_specs=pl.BlockSpec((tile_n, D), lambda i: (i, 0)),
        compiler_params=pltpu.CompilerParams(
            dimension_semantics=("parallel",),
            vmem_limit_bytes=32 * 1024 * 1024),
    )(nbr_h, time, orig, te_params, w_all)
    return out[:N]


# ----------------------------------------------------------------------------
# Module wrapper (glue in plain JAX: param setup, neighbor gather)
# ----------------------------------------------------------------------------
def init_params(key, hidden):
    ks = jax.random.split(key, 4)
    s = 1.0 / math.sqrt(hidden)
    s2 = 1.0 / math.sqrt(2 * hidden)
    uni = lambda k, shape, sc: jax.random.uniform(
        k, shape, dtype=jnp.float32, minval=-sc, maxval=sc)
    # TimeEncode params (deterministic, identical for q and k encoders)
    freq = (1.0 / 10 ** jnp.linspace(0.0, 9.0, hidden)).astype(jnp.float32)
    phase = jnp.zeros((hidden,), jnp.float32)
    return {
        "user_weight": uni(ks[0], (hidden, hidden), s),       # nn.Linear(D, D)
        "item_weight": uni(ks[1], (hidden, hidden), s),
        "user_update": uni(ks[2], (hidden, 2 * hidden), s2),  # nn.Linear(2D, D)
        "item_update": uni(ks[3], (hidden, 2 * hidden), s2),
        "u_basis_freq": freq, "u_phase": phase,
        "u_basis_freq_k": freq, "u_phase_k": phase,
        "i_basis_freq": freq, "i_phase": phase,
        "i_basis_freq_k": freq, "i_phase_k": phase,
    }


def dgsr_forward(params, user_feat, item_feat,
                 user_nbr_idx, user_nbr_time, item_nbr_idx, item_nbr_time,
                 *, share_time_encoding=True):
    # feat_drop / atten_drop run in eval mode -> identity.
    # user_h / item_h are only needed for the cross-type mailbox gather; the
    # dst-side projection is recomputed inside the fused attention kernel.
    user_h = linear(user_feat, params["user_weight"])   # user_weight(user_)
    item_h = linear(item_feat, params["item_weight"])   # item_weight(item_)

    # mailbox gather (graph glue, plain JAX)
    user_mb_item_h = jnp.take(item_h, user_nbr_idx, axis=0)   # (NU, Lu, D)
    item_mb_user_h = jnp.take(user_h, item_nbr_idx, axis=0)   # (NI, Li, D)

    # merged TimeEncode params: rows = [freq_q, phase_q, freq_k, phase_k]
    te_u = jnp.stack([params["u_basis_freq"], params["u_phase"],
                      params["u_basis_freq_k"], params["u_phase_k"]])
    te_i = jnp.stack([params["i_basis_freq"], params["i_phase"],
                      params["i_basis_freq_k"], params["i_phase_k"]])

    # merged, pre-transposed weights: [W_h.T ; W_update.T] -> (3D, D)
    w_u = jnp.concatenate([params["user_weight"].T, params["user_update"].T], axis=0)
    w_i = jnp.concatenate([params["item_weight"].T, params["item_update"].T], axis=0)

    # user_reduce_func (orgat) + user_update_function
    user_out = attn_reduce_update(user_mb_item_h, user_nbr_time, user_feat,
                                  te_u, w_u, share_te=share_time_encoding)
    # item_reduce_func (orgat) + item_update_function
    item_out = attn_reduce_update(item_mb_user_h, item_nbr_time, item_feat,
                                  te_i, w_i, share_te=share_time_encoding)
    return {"user": user_out, "item": item_out}


# pure-JAX reference for verification
def dgsr_reference(params, user_feat, item_feat,
                   user_nbr_idx, user_nbr_time, item_nbr_idx, item_nbr_time):
    D = user_feat.shape[-1]

    def time_enc(t, freq, phase):
        return jnp.cos(t[..., None] * freq + phase)

    def reduce(dst_h, nbr_h, t, orig, w_update, fq, pq, fk, pk):
        e = jnp.sum((time_enc(t, fq, pq) + nbr_h) * dst_h[:, None, :],
                    axis=2) / math.sqrt(D)
        alpha = jax.nn.softmax(e, axis=1)
        h_long = jnp.sum(alpha[:, :, None] * (nbr_h + time_enc(t, fk, pk)), axis=1)
        y = jnp.concatenate([h_long, orig], axis=-1) @ w_update.T
        return jnp.where(y > 0, y, jnp.expm1(y))

    user_h = user_feat @ params["user_weight"].T
    item_h = item_feat @ params["item_weight"].T
    user_out = reduce(user_h, item_h[user_nbr_idx], user_nbr_time, user_feat,
                      params["user_update"],
                      params["u_basis_freq"], params["u_phase"],
                      params["u_basis_freq_k"], params["u_phase_k"])
    item_out = reduce(item_h, user_h[item_nbr_idx], item_nbr_time, item_feat,
                      params["item_update"],
                      params["i_basis_freq"], params["i_phase"],
                      params["i_basis_freq_k"], params["i_phase_k"])
    return {"user": user_out, "item": item_out}


if __name__ == "__main__":
    D = 32            # hidden_size (in_feats)
    NU, NI = 16, 16   # number of user / item nodes
    LU, LI = 8, 8     # user_max_length / item_max_length (mailbox sizes)

    key = jax.random.PRNGKey(0)
    kp, ku, ki, kiu, kit, kui, kut = jax.random.split(key, 7)

    params = init_params(kp, D)
    user_feat = jax.random.normal(ku, (NU, D), jnp.float32)
    item_feat = jax.random.normal(ki, (NI, D), jnp.float32)
    user_nbr_idx = jax.random.randint(kiu, (NU, LU), 0, NI)
    user_nbr_time = jax.random.uniform(kit, (NU, LU), jnp.float32, 0.0, 10.0)
    item_nbr_idx = jax.random.randint(kui, (NI, LI), 0, NU)
    item_nbr_time = jax.random.uniform(kut, (NI, LI), jnp.float32, 0.0, 10.0)

    out = dgsr_forward(params, user_feat, item_feat,
                       user_nbr_idx, user_nbr_time, item_nbr_idx, item_nbr_time)
    jax.block_until_ready(out)

    ref = dgsr_reference(params, user_feat, item_feat,
                         user_nbr_idx, user_nbr_time, item_nbr_idx, item_nbr_time)
    np.testing.assert_allclose(np.asarray(out["user"]), np.asarray(ref["user"]),
                               rtol=3e-3, atol=3e-3)
    np.testing.assert_allclose(np.asarray(out["item"]), np.asarray(ref["item"]),
                               rtol=3e-3, atol=3e-3)
    print("KERNEL_OK")
</pallas_src>

<mosaic_0001>
module attributes {stable_mosaic.version = 11 : i64} {
  func.func @linear_kernel(%arg0: i32, %arg1: memref<8x32xf32, #tpu.memory_space<vmem>>, %arg2: memref<32x32xf32, #tpu.memory_space<vmem>>, %arg3: memref<8x32xf32, #tpu.memory_space<vmem>>) attributes {dimension_semantics = [#tpu.dimension_semantics<parallel>], iteration_bounds = array<i64: 2>, scalar_prefetch = 0 : i64, scratch_operands = 0 : i64, tpu.core_type = #tpu.core_type<tc>, window_params = [{transform_indices = @transform_0, window_bounds = array<i64: 8, 32>}, {pipeline_mode = #tpu.pipeline_mode<synchronous>, transform_indices = @transform_1, window_bounds = array<i64: 32, 32>}, {transform_indices = @transform_2, window_bounds = array<i64: 8, 32>}]} {
    %c0 = arith.constant 0 : index
    %c0_0 = arith.constant 0 : index
    %0 = vector.load %arg1[%c0, %c0_0] : memref<8x32xf32, #tpu.memory_space<vmem>>, vector<8x32xf32>
    %c0_1 = arith.constant 0 : index
    %c0_2 = arith.constant 0 : index
    %1 = vector.load %arg2[%c0_1, %c0_2] : memref<32x32xf32, #tpu.memory_space<vmem>>, vector<32x32xf32>
    %cst = arith.constant dense<0.000000e+00> : vector<8x32xf32>
    %2 = tpu.matmul %0, %1, %cst {dimension_numbers = #tpu.dot_dimension_numbers<[1], [0], [0], [1], [0, 0, 1, 1], [], []>} : vector<8x32xf32>, vector<32x32xf32>, vector<8x32xf32> -> vector<8x32xf32>
    %c0_3 = arith.constant 0 : index
    %c0_4 = arith.constant 0 : index
    %3 = vector.load %arg3[%c0_3, %c0_4] : memref<8x32xf32, #tpu.memory_space<vmem>>, vector<8x32xf32>
    tpu.vector_store %arg3[%c0_3, %c0_4], %2 {strides = array<i32>} : memref<8x32xf32, #tpu.memory_space<vmem>>, vector<8x32xf32>,
    return
  }
  func.func @transform_0(%arg0: i32) -> (i32, i32) {
    %c0_i32 = arith.constant 0 : i32
    %c0_i32_0 = arith.constant 0 : i32
    return %arg0, %c0_i32 : i32, i32
  }
  func.func @transform_1(%arg0: i32) -> (i32, i32) {
    %c0_i32 = arith.constant 0 : i32
    %c0_i32_0 = arith.constant 0 : i32
    %c0_i32_1 = arith.constant 0 : i32
    return %c0_i32, %c0_i32_0 : i32, i32
  }
  func.func @transform_2(%arg0: i32) -> (i32, i32) {
    %c0_i32 = arith.constant 0 : i32
    %c0_i32_0 = arith.constant 0 : i32
    return %arg0, %c0_i32 : i32, i32
  }
}

</mosaic_0001>

<bundles_post_ra>
// kernel: tpu_custom_call.1
= control target key start
LH: loop header
LB: loop body
LE: loop exit
PB: predicated region body
PF: predicated region fallthrough
CT: control target
= control target key end

     0   :  { %7 = vsyncpa [#allocation3], 0  ;;  %s796_s0 = inlined_call_operand.hbm [shape: f32[16,32], index: 0, kind: input, shape index: {}]   ;;  %s797_s1 = inlined_call_operand.hbm [shape: f32[32,32], index: 1, kind: input, shape index: {}]   ;;  %s798_s2 = inlined_call_operand.hbm [shape: f32[16,32], index: 2, kind: output, shape index: {}]  }
   0x1   :  { %9 = vsyncpa [#allocation3 + $0x1], 0 }
   0x2   :  { %10 = vsyncpa [#allocation6], 0 }
   0x3   :  { %11 = vsyncpa [#allocation4], 0 }
   0x4   :  { %13 = vsyncpa [#allocation4 + $0x1], 0  ;;  %s600_s9 = smov 0   ;;  %s602_s10 = smov 0  }
   0x5   :  { %s604_s11 = smov 0   ;;  %s606_s12 = smov 0  }
   0x6 LB: > { %s621_s13 = sadd.s32 4294967295, %s575_s12   ;;  %s348_s14 = sadd.s32 4294967294, %s575_s12   ;;  %s575_s12 = sphi %s606_s12, %s818_s12   ;;  %s571_s11 = sphi %s604_s11, %s817_s11   ;;  %s567_s10 = sphi %s602_s10, %s816_s10   ;;  %s563_s9 = sphi %s600_s9, %s815_s9  }
   0x7   : > { %p39_p0 = scmp.ne.s32.totalorder %s567_s10, %s563_s9  ;;  %p799_p1 = scmp.eq.s32.totalorder %s621_s13, 0 }
   0x8   : > { %p90_p3 = scmp.eq.s32.totalorder %s348_s14, 1  ;;  %p349_p5 = scmp.ge.s32.totalorder %s575_s12, 1 }
   0x9   : > { %p630_p4 = por %p799_p1, %p39_p0  ;;  %p97_p7 = scmp.lt.s32.totalorder %s575_s12, 3 }
   0xa   : > { %p635_p6 = por %p90_p3, %p39_p0  ;;  %s577_s18 = smov [#allocation5]  }
   0xb   : > { %s802_s15 = scalar_select %p630_p4, 1, 0 }
   0xc   : > { %s803_s16 = scalar_select %p635_p6, 1, 0 }
   0xd   : > { %p640_p8 = pnand %p349_p5, %p97_p7  ;;  %s109_s19 = sshll.u32 %s577_s18, 4  ;;  %s644_s19 = int_to_ptr.vmem [resolvable:$true] %s109_s19 }
   0xe   : > { %s656_s21 = sadd.s32 1, %s575_s12   ;;  %s26_s22 = sadd.s32 1, %s571_s11 }
   0xf   : > { %s804_s17 = scalar_select %p640_p8, 1, 0 }
  0x10   : > { %p393_p9 = pneg %p640_p8  ;;  %s23_s23 = ssub.s32 %s575_s12, %s656_s21 }
  0x11   : > { %s447_s26 = scalar_lea.hbm %s797_s1, 512 }
  0x12   : > { %p651_p11 = pnand %p393_p9, %p799_p1  ;;  %p448_p12 = scmp.ne.s32.totalorder %s797_s1, %s447_s26 }
  0x13   : > { %p454_p5 = scmp.lt.u32.totalorder %s447_s26, %s797_s1 }
  0x14   : > { %p449_p13 = pneg %p651_p11 }
  0x16   : > { %p450_p0 = pnand %p449_p13, %p448_p12 }
  0x18   : > { %p451_p3 = pneg %p450_p0 }
  0x1a   : > { %p456_p7 = pnand %p454_p5, %p451_p3 }
  0x1c   : > { %459 = shalt.err (!%p456_p7)
}
  0x1d   : > { %s460_s3 = scalar_lea.vmem %s644_s19, 512  ;;  %p468_p2 = scmp.lt.s32.totalorder %s644_s19, %s644_s19 }
  0x1e   : > { %p461_p9 = scmp.ne.s32.totalorder %s644_s19, %s460_s3  ;;  %p469_p6 = scmp.lt.s32.totalorder %s460_s3, %s460_s3 }
  0x20   : > { %p463_p10 = pnand %p461_p9, %p449_p13  ;;  %p470_p4 = por %p469_p6, %p468_p2 }
  0x22   : > { %p464_p1 = pneg %p463_p10 }
  0x24   : > { %p471_p8 = pnand %p470_p4, %p464_p1 }
  0x26   : > { %474 = shalt.err (!%p471_p8)
}
  0x27   : > { %s578_s4 = smov 128   ;;  %s579_s5 = smov 8  }
  0x28   : > { %396 = dma.hbm_to_vmem [thread:$0]  (!%p651_p11), %s797_s1, 512, %s644_s19, [#allocation6], %s578_s4, %s578_s4, %s579_s5  }
  0x29   : > { %p24_p2 = scmp.eq.s32.totalorder %s23_s23, 0  ;;  %p33_p1 = scmp.ne.s32.totalorder %s571_s11, %s567_s10 }
  0x2a   : > { %p34_p4 = scmp.eq.s32.totalorder %s575_s12, 0  ;;  %p406_p6 = scmp.lt.s32.totalorder %s575_s12, 2 }
  0x2b   : > { %s687_s8 = scalar_select %p24_p2, %s571_s11, %s26_s22  }
  0x2c   : > { %p35_p8 = por %p34_p4, %p33_p1  ;;  %p806_p10 = scmp.eq.s32.totalorder %s621_s13, 1 }
  0x2d   : > { %s123_s18 = sand.u32 1, %s571_s11   ;;  %s353_s24 = sshll.u32 %s575_s12, 7 }
  0x2e   : > { %p691_p12 = por %p806_p10, %p33_p1  ;;  %s352_s25 = sshll.u32 %s123_s18, 3 }
  0x2f   : > { %s700_s27 = scalar_lea.hbm %s796_s0, %s353_s24  ;;  %s127_s19 = scalar_lea.vmem [#allocation2], %s352_s25 }
  0x30   : > { %s134_s22 = sshll.u32 %s127_s19, 4  ;;  %p702_p11 = pnand %p406_p6, %p35_p8  ;;  %s706_s22 = int_to_ptr.vmem [resolvable:$true] %s134_s22 }
  0x31   : > { %s124_s28 = scalar_lea.sflag [#allocation3], %s123_s18  ;;  %s475_s29 = scalar_lea.hbm %s700_s27, 128 }
  0x32   : > { %p476_p13 = scmp.ne.s32.totalorder %s700_s27, %s475_s29  ;;  %p477_p0 = pneg %p702_p11 }
  0x33   : > { %s480_s4 = scalar_lea.hbm %s796_s0, 256  ;;  %p481_p7 = scmp.lt.u32.totalorder %s700_s27, %s796_s0 }
  0x34   : > { %p478_p3 = pnand %p477_p0, %p476_p13  ;;  %p482_p9 = scmp.lt.u32.totalorder %s480_s4, %s475_s29 }
  0x35   : > { %p484_p1 = scmp.lt.u32.totalorder %s475_s29, %s700_s27 }
  0x36   : > { %p479_p5 = pneg %p478_p3  ;;  %p483_p2 = por %p482_p9, %p481_p7 }
  0x38   : > { %p485_p4 = por %p484_p1, %p483_p2 }
  0x3a   : > { %p486_p6 = pnand %p485_p4, %p479_p5 }
  0x3c   : > { %489 = shalt.err (!%p486_p6)
}
  0x3d   : > { %s490_s7 = scalar_lea.vmem %s706_s22, 128  ;;  %s580_s18 = smov [#allocation2]  }
  0x3e   : > { %p491_p8 = scmp.ne.s32.totalorder %s706_s22, %s490_s7  ;;  %s495_s24 = sshll.u32 %s580_s18, 4  ;;  %s496_s24 = int_to_ptr.vmem [resolvable:$false] %s495_s24 }
  0x3f   : > { %s497_s25 = scalar_lea.vmem %s496_s24, 256  ;;  %p498_p3 = scmp.lt.s32.totalorder %s706_s22, %s496_s24 }
  0x40   : > { %p493_p10 = pnand %p491_p8, %p477_p0  ;;  %p499_p7 = scmp.lt.s32.totalorder %s497_s25, %s490_s7 }
  0x42   : > { %p494_p13 = pneg %p493_p10  ;;  %p500_p9 = por %p499_p7, %p498_p3 }
  0x44   : > { %p501_p2 = pnand %p500_p9, %p494_p13 }
  0x46   : > { %504 = shalt.err (!%p501_p2)
}
  0x47   : > { %400 = dma.hbm_to_vmem [thread:$0]  (!%p702_p11), %s700_s27, 128, %s706_s22, %s124_s28  }
  0x48   : > { %p809_p5 = scmp.ne.s32.totalorder %s804_s17, 0 }
  0x49   : > { %s736_s20 = sand.u32 (!%p809_p5), 1, %s567_s10   ;;  %p810_p0 = scmp.ne.s32.totalorder (!%p809_p5), %s802_s15, 0 }
  0x4a   : > { %143 = sbr.rel (%p809_p5) target bundleno = 321 (0x141), region = 28  ;;  %s355_s26 = sshll.u32 (!%p809_p5), %s736_s20, 3 }
  0x4b   : > { %s146_s19 = scalar_lea.sflag (!%p809_p5), [#allocation3], %s736_s20  ;;  %s149_s29 = scalar_lea.vmem (!%p809_p5), [#allocation2], %s355_s26 }
  0x51   : > { %550 = dma.done.wait (%p810_p0), %s146_s19, 128  }
  0x52   : > { %552 = vsyncadd (%p810_p0), %s146_s19, 4294967168  ;;  %p811_p1 = scmp.eq.s32.totalorder %s621_s13, 0 }
  0x54   : > { %554 = dma.done.wait (%p811_p1), [#allocation6], 512   ;;  %p812_p11 = pmov %p811_p1 }
  0x55   : > { %v581_v0 = vmov 0.0|0.0   ;;  %vm582_vm0 = vmmov 0   ;;  %v583_v1 = vmov 0.0   ;;  %v175_v2 = vld [vmem:[#allocation5] sm:$0xff]  ;;  %v176_v3 = vld [vmem:[#allocation5 + $0x8] sm:$0xff]  ;;  %v177_v4 = vld [vmem:[#allocation5 + $0x10] sm:$0xff] }
  0x56   : > { %556 = vsyncadd (%p812_p11), [#allocation6], 4294966784  ;;  %379 = vmatprep.subr.bf16.mxu0 %v581_v0  ;;  %376 = vmatprep.mubr.msk.f32.mxu0 %vm582_vm0, %v583_v1  ;;  %v380_v5 = vpack.c.bf16 %v176_v3, %v175_v2  ;;  %v178_v6 = vld [vmem:[#allocation5 + $0x18] sm:$0xff]  ;;  %vm179_vm1 = vcmask 261120   ;;  %s360_s15 = sshll.u32 %s621_s13, 7  ;;  %s173_s17 = scalar_lea.vmem [#allocation7], %s355_s26 }
  0x57   : > { %v383_v7 = vpack.c.bf16 %v178_v6, %v177_v4  ;;  %v174_v8 = vld [vmem:[%s149_s29] sm:$0xff]  ;;  %s268_s27 = sshll.u32 %s173_s17, 4  ;;  %s752_s28 = scalar_lea.hbm %s798_s2, %s360_s15  ;;  %s754_s27 = int_to_ptr.vmem [resolvable:$true] %s268_s27 }
  0x58   : > { %381 = vmatpush3.bf16.msra.mxu0 %v380_v5  ;;  %s255_s30 = scalar_lea.sflag [#allocation4], %s736_s20  ;;  %s505_s3 = scalar_lea.vmem %s754_s27, 128 }
  0x59   : > { %382 = vmatprep.subr.bf16.mxu0 %v581_v0  ;;  %p506_p4 = scmp.ne.s32.totalorder %s754_s27, %s505_s3  ;;  %s584_s13 = smov [#allocation7]  }
  0x5a   : > { %s509_s4 = sshll.u32 %s584_s13, 4  ;;  %s510_s4 = int_to_ptr.vmem [resolvable:$false] %s509_s4 }
  0x5b   : > { %p507_p6 = pnand %p506_p4, %p691_p12  ;;  %s511_s5 = scalar_lea.vmem %s510_s4, 256 }
  0x5c   : > { %384 = vmatpush3.bf16.msra.mxu0 %v383_v7  ;;  %p512_p10 = scmp.lt.s32.totalorder %s754_s27, %s510_s4  ;;  %p513_p13 = scmp.lt.s32.totalorder %s511_s5, %s505_s3 }
  0x5d   : > { %p508_p8 = pneg %p507_p6 }
  0x5e   : > { %p514_p3 = por %p513_p13, %p512_p10 }
  0x5f   : > { %377 = vmatmul.mubr.msk.f32.vlgmr.msra.gmra.mrb[0].mxu0 %vm179_vm1, %v174_v8 }
  0x60   : > { %p515_p7 = pnand %p514_p3, %p508_p8 }
 0x132   : > { %v249_v9 = vpop.f32.mrb[0].mxu0 }
 0x133   : > { %253 = vst.msk [vmem:[%s173_s17] sm:$0xff] %vm179_vm1, %v249_v9  ;;  %v378_v10 = vpop.f32.mrb[1].mxu0 }
 0x134   : > { %518 = shalt.err (!%p515_p7)
}
 0x135   : > { %s519_s6 = scalar_lea.hbm %s752_s28, 128  ;;  %s523_s24 = scalar_lea.hbm %s798_s2, 256 }
 0x136   : > { %p520_p9 = scmp.ne.s32.totalorder %s752_s28, %s519_s6  ;;  %p524_p0 = scmp.lt.u32.totalorder %s752_s28, %s798_s2 }
 0x137   : > { %p525_p1 = scmp.lt.u32.totalorder %s523_s24, %s519_s6  ;;  %p527_p4 = scmp.lt.u32.totalorder %s519_s6, %s752_s28 }
 0x138   : > { %p521_p2 = pnand %p520_p9, %p691_p12 }
 0x139   : > { %p526_p11 = por %p525_p1, %p524_p0 }
 0x13a   : > { %p522_p5 = pneg %p521_p2 }
 0x13b   : > { %p528_p6 = por %p527_p4, %p526_p11 }
 0x13d   : > { %p529_p8 = pnand %p528_p6, %p522_p5 }
 0x13f   : > { %532 = shalt.err (!%p529_p8)
}
 0x140   : > { %391 = dma.vmem_to_hbm [thread:$0]  (%p691_p12), %s754_s27, 128, %s752_s28, %s255_s30  }
 0x141 PF: > { %s280_s26 = sand.u32 1, %s563_s9   ;;  %p813_p10 = scmp.ne.s32.totalorder %s803_s16, 0 }
 0x142   : > { %p814_p13 = scmp.ge.s32.totalorder %s575_s12, 2  ;;  %s281_s19 = scalar_lea.sflag [#allocation4], %s280_s26 }
 0x144   : > { %p402_p3 = pnand %p814_p13, %p813_p10 }
 0x146   : > { %558 = dma.done.wait (!%p402_p3), %s281_s19, 128  }
 0x147   : > { %560 = vsyncadd (!%p402_p3), %s281_s19, 4294967168  ;;  %p16_p7 = scmp.ge.s32.totalorder %s656_s21, 4   ;;  %s815_s9 = smov %s567_s10 }
 0x148   : > { %s816_s10 = smov %s571_s11  ;;  %s817_s11 = smov %s687_s8 }
 0x149   : > { %s818_s12 = smov %s656_s21  ;;  %18 = sbr.rel (!%p16_p7) target bundleno = 6 (0x6), region = 77 }
 0x150   :  { %286 = vsyncpa [#allocation3], 1 }
 0x151   :  { %288 = vsyncpa [#allocation3 + $0x1], 1 }
 0x152   :  { %289 = vsyncpa [#allocation6], 1 }
 0x153   :  { %290 = vsyncpa [#allocation4], 1 }
 0x154   :  { %292 = vsyncpa [#allocation4 + $0x1], 1 }

</bundles_post_ra>
